<compile_context>
chip_gen: v6e
topology: v6e:2x2x1
jax: 0.10.0
libtpu: 0.0.40
codegen_flags: <defaults>
</compile_context>

<pallas_src>
import functools

import numpy as np

import jax
import jax.numpy as jnp
from jax import lax
from jax.experimental import pallas as pl
from jax.experimental.pallas import tpu as pltpu


# ------------------------------ fused kernel --------------------------------

def _tgcn_cell_kernel(x_ref, h_ref, perm_ref, w1_ref, w2_ref, b1_ref, b2_ref,
                      o_ref, *, n, h, bt):
    """One batch tile (bt graphs): full T-GCN GRU cell, everything in VMEM."""
    x = x_ref[...]            # (bt, N, N)  adjacency
    hm = h_ref[...]           # (bt, N, H)  hidden state in node layout

    # d = rowsum(X + I)^(-1/2) = (rowsum(X) + 1)^(-1/2); inf -> 0 like torch.
    row_sum = jnp.sum(x, axis=2, keepdims=True) + 1.0      # (bt, N, 1)
    d = lax.rsqrt(row_sum)
    d = jnp.where(jnp.isinf(d), jnp.zeros_like(d), d)

    # L @ C = D A^T D C with A = X + I handled analytically: A^T @ M = X^T @ M + M.
    def graph_conv(feat, w_ref, b_ref):
        c = jnp.concatenate([x, feat], axis=2)              # (bt, N, N+H) = [X | feat]
        dc = d * c                                           # D @ C (row scaling)
        # batched X^T @ dc  (batch dim b, contract the row index j of both)
        at_dc = jnp.einsum('bji,bjk->bik', x, dc,
                           preferred_element_type=jnp.float32) + dc
        lc = d * at_dc                                       # L @ [X | feat]
        # projection: (bt, N, N+H) @ (N+H, out) -> (bt, N, out), bias broadcast
        return jnp.einsum('bnk,ko->bno', lc, w_ref[...],
                          preferred_element_type=jnp.float32) + b_ref[...]

    # conv1 (+ fused sigmoid): gates in node layout, (bt, N, 2H).
    conc = jax.nn.sigmoid(graph_conv(hm, w1_ref, b1_ref))

    # torch.chunk on the node-major flattened (b, N*2H) gate tensor:
    #   r[b, n, :] = conc[b, n//2,     (n%2)*H     : (n%2+1)*H]
    #   u[b, n, :] = conc[b, (N+n)//2, ((N+n)%2)*H : ((N+n)%2+1)*H]
    # realised exactly with a small constant (2N, 2N) per-batch permutation.
    stacked = jnp.concatenate([conc[..., :h], conc[..., h:]], axis=1)  # (bt, 2N, H)
    perm_b = jnp.broadcast_to(perm_ref[...], (bt, 2 * n, 2 * n))
    ru = jnp.einsum('bij,bjh->bih', perm_b, stacked,
                    preferred_element_type=jnp.float32)                # (bt, 2N, H)
    r = ru[:, :n, :]                                                    # (bt, N, H)
    u = ru[:, n:, :]                                                    # (bt, N, H)

    # conv2 on (X, r*h) + tanh, then GRU combine — all still in VMEM.
    cval = jnp.tanh(graph_conv(r * hm, w2_ref, b2_ref))                 # (bt, N, H)
    o_ref[...] = (u * hm + (1.0 - u) * cval).astype(o_ref.dtype)


# ------------------------- host-side constant helpers ------------------------

def _chunk_permutation(n):
    """(2N, 2N) 0/1 matrix mapping stacked = [conc[..., :H]; conc[..., H:]]
    (rows: N 'first-half-channel' rows then N 'second-half-channel' rows) to
    [r; u] in node layout, reproducing torch.chunk(dim=1) on the node-major
    flattened (b, N*2H) gate tensor.  Exact for any N and H."""
    p = np.zeros((2 * n, 2 * n), np.float32)
    for node in range(n):
        p[node, node // 2 + (node % 2) * n] = 1.0                # r rows
        m = n + node
        p[n + node, m // 2 + (m % 2) * n] = 1.0                  # u rows
    return p


def _vmem_bytes_estimate(bt, n, h):
    """Rough, conservative per-grid-step VMEM footprint (f32 bytes)."""
    streamed = 2 * bt * n * (n + 2 * h)            # x + hidden + out, double-buffered
    interm = bt * (3 * n * (n + h)                 # [X|feat], D-scaled, L@[X|feat]
                   + n * 2 * h                     # conv1 gates
                   + 4 * n * h                     # stacked + ru
                   + 4 * n * n                     # broadcast chunk permutation
                   + 3 * n * h)                    # r*h, c, output staging
    consts = (n + h) * 3 * h + 4 * n * n + 3 * h   # w1, w2, perm, biases (single-buffered)
    return 4 * (streamed + interm + consts)


def _pick_batch_tile(batch, n, h, budget_bytes=20 * 1024 * 1024):
    """Largest divisor of `batch` that (a) leaves >= 2 grid steps when batch >= 2
    (so the 'parallel' grid axis can span v7x's two TensorCores) and (b) keeps the
    per-step VMEM estimate under budget (headroom under v7x's 64 MiB VMEM).
    Single-TC parts (v5e/v6e) can pass batch_tile=batch to minimize grid steps."""
    best = 1
    for bt in range(1, batch + 1):
        if batch % bt:
            continue
        if batch >= 2 and batch // bt < 2:
            continue
        if _vmem_bytes_estimate(bt, n, h) > budget_bytes:
            continue
        best = max(best, bt)
    return best


# ------------------------------- JAX wrapper ---------------------------------

@functools.partial(jax.jit, static_argnames=("batch_tile",))
def tgcn_cell(inputs, hidden_state, w1, b1, w2, b2, *, batch_tile=None):
    """Pallas TGCNCell.forward -> (new_hidden_state, new_hidden_state)."""
    B, N, F = inputs.shape
    assert F == N, "TGCN adds eye(num_nodes): features must equal num_nodes"
    H = hidden_state.shape[1] // N
    bt = batch_tile if batch_tile is not None else _pick_batch_tile(B, N, H)
    assert B % bt == 0

    # Free contiguous reshapes / casts only — no compute hoisted out of the kernel.
    x3 = inputs.astype(jnp.float32)                              # (B, N, N)
    h3 = hidden_state.reshape(B, N, H).astype(jnp.float32)       # (B, N, H)
    perm = jnp.asarray(_chunk_permutation(N))                    # (2N, 2N) constant
    b1m = b1.reshape(1, -1).astype(jnp.float32)
    b2m = b2.reshape(1, -1).astype(jnp.float32)

    const = dict(pipeline_mode=pl.Buffered(1))                   # grid-invariant operands
    kernel = functools.partial(_tgcn_cell_kernel, n=N, h=H, bt=bt)
    out = pl.pallas_call(
        kernel,
        out_shape=jax.ShapeDtypeStruct((B, N, H), jnp.float32),
        grid_spec=pltpu.PrefetchScalarGridSpec(
            num_scalar_prefetch=0,
            grid=(B // bt,),
            in_specs=[
                pl.BlockSpec((bt, N, N), lambda i: (i, 0, 0)),               # inputs
                pl.BlockSpec((bt, N, H), lambda i: (i, 0, 0)),               # hidden
                pl.BlockSpec((2 * N, 2 * N), lambda i: (0, 0), **const),     # chunk perm
                pl.BlockSpec((N + H, 2 * H), lambda i: (0, 0), **const),     # w1
                pl.BlockSpec((N + H, H), lambda i: (0, 0), **const),         # w2
                pl.BlockSpec((1, 2 * H), lambda i: (0, 0), **const),         # b1
                pl.BlockSpec((1, H), lambda i: (0, 0), **const),             # b2
            ],
            out_specs=pl.BlockSpec((bt, N, H), lambda i: (i, 0, 0)),
        ),
        compiler_params=pltpu.CompilerParams(
            dimension_semantics=("parallel",),        # batch tiles split across TCs (v7x)
            vmem_limit_bytes=48 * 1024 * 1024,        # above 32 MiB default, < v7x physical
        ),
    )(x3, h3, perm, w1.astype(jnp.float32), w2.astype(jnp.float32), b1m, b2m)

    new_h = out.reshape(B, N * H)                                # contiguous -> free
    return new_h, new_h


# ---------------------- deterministic parameter init ------------------------

def xavier_uniform(key, shape, dtype=jnp.float32):
    fan_in, fan_out = shape
    a = (6.0 / (fan_in + fan_out)) ** 0.5
    return jax.random.uniform(key, shape, dtype, minval=-a, maxval=a)


def init_tgcn_cell_params(key, input_dim, hidden_dim):
    k1, k2 = jax.random.split(key)
    w1 = xavier_uniform(k1, (hidden_dim + input_dim, 2 * hidden_dim))
    b1 = jnp.full((2 * hidden_dim,), 1.0, jnp.float32)        # bias = 1.0
    w2 = xavier_uniform(k2, (hidden_dim + input_dim, hidden_dim))
    b2 = jnp.zeros((hidden_dim,), jnp.float32)                # bias = 0.0
    return w1, b1, w2, b2


# ------------------------------ pure-JAX ref ---------------------------------

def _reference(inputs, hidden, w1, b1, w2, b2):
    B, N, _ = inputs.shape
    H = hidden.shape[1] // N

    def gconv(x, hflat, w, b):
        hmat = hflat.reshape(B, N, H)
        a = x + jnp.eye(N, dtype=x.dtype)
        d = lax.rsqrt(a.sum(axis=2))
        d = jnp.where(jnp.isinf(d), 0.0, d)
        dm = jax.vmap(jnp.diag)(d)
        lap = jnp.swapaxes(jnp.matmul(a, dm), 1, 2) @ dm
        cat = jnp.concatenate([x, hmat], axis=2)
        ac = jnp.einsum('bnc,bck->bnk', lap, cat)
        out = ac.reshape(B * N, -1) @ w + b
        return out.reshape(B, N * w.shape[1])

    conc = jax.nn.sigmoid(gconv(inputs, hidden, w1, b1))
    r, u = conc[:, : N * H], conc[:, N * H:]
    c = jnp.tanh(gconv(inputs, r * hidden, w2, b2))
    return u * hidden + (1.0 - u) * c


# ---------------------------------- main -------------------------------------

if __name__ == "__main__":
    B = 2
    input_dim = 8           # == num_nodes (module adds eye(num_nodes) to inputs)
    hidden_dim = 16

    key = jax.random.PRNGKey(0)
    k_in, k_h, k_p = jax.random.split(key, 3)

    # positive inputs -> positive row sums (the torch model would NaN otherwise)
    inputs = jax.random.uniform(k_in, (B, input_dim, input_dim), jnp.float32)
    hidden_state = jax.random.normal(k_h, (B, input_dim * hidden_dim), jnp.float32)

    w1, b1, w2, b2 = init_tgcn_cell_params(k_p, input_dim, hidden_dim)

    new_h, out = tgcn_cell(inputs, hidden_state, w1, b1, w2, b2)
    new_h = jax.block_until_ready(new_h)

    ref = _reference(inputs, hidden_state, w1, b1, w2, b2)
    assert new_h.shape == (B, input_dim * hidden_dim)
    assert jnp.allclose(new_h, ref, rtol=1e-4, atol=1e-4), "mismatch vs reference"

    print("KERNEL_OK")
</pallas_src>

<mosaic_0001>
module attributes {stable_mosaic.version = 11 : i64} {
  func.func @_tgcn_cell_kernel(%arg0: i32, %arg1: memref<1x8x8xf32, #tpu.memory_space<vmem>>, %arg2: memref<1x8x16xf32, #tpu.memory_space<vmem>>, %arg3: memref<16x16xf32, #tpu.memory_space<vmem>>, %arg4: memref<24x32xf32, #tpu.memory_space<vmem>>, %arg5: memref<24x16xf32, #tpu.memory_space<vmem>>, %arg6: memref<1x32xf32, #tpu.memory_space<vmem>>, %arg7: memref<1x16xf32, #tpu.memory_space<vmem>>, %arg8: memref<1x8x16xf32, #tpu.memory_space<vmem>>) attributes {dimension_semantics = [#tpu.dimension_semantics<parallel>], iteration_bounds = array<i64: 2>, scalar_prefetch = 0 : i64, scratch_operands = 0 : i64, tpu.core_type = #tpu.core_type<tc>, window_params = [{transform_indices = @transform_0, window_bounds = array<i64: 1, 8, 8>}, {transform_indices = @transform_1, window_bounds = array<i64: 1, 8, 16>}, {pipeline_mode = #tpu.pipeline_mode<synchronous>, transform_indices = @transform_2, window_bounds = array<i64: 16, 16>}, {pipeline_mode = #tpu.pipeline_mode<synchronous>, transform_indices = @transform_3, window_bounds = array<i64: 24, 32>}, {pipeline_mode = #tpu.pipeline_mode<synchronous>, transform_indices = @transform_4, window_bounds = array<i64: 24, 16>}, {pipeline_mode = #tpu.pipeline_mode<synchronous>, transform_indices = @transform_5, window_bounds = array<i64: 1, 32>}, {pipeline_mode = #tpu.pipeline_mode<synchronous>, transform_indices = @transform_6, window_bounds = array<i64: 1, 16>}, {transform_indices = @transform_7, window_bounds = array<i64: 1, 8, 16>}]} {
    %c0 = arith.constant 0 : index
    %c0_0 = arith.constant 0 : index
    %c0_1 = arith.constant 0 : index
    %0 = vector.load %arg1[%c0, %c0_0, %c0_1] : memref<1x8x8xf32, #tpu.memory_space<vmem>>, vector<1x8x8xf32>
    %c0_2 = arith.constant 0 : index
    %c0_3 = arith.constant 0 : index
    %c0_4 = arith.constant 0 : index
    %1 = vector.load %arg2[%c0_2, %c0_3, %c0_4] : memref<1x8x16xf32, #tpu.memory_space<vmem>>, vector<1x8x16xf32>
    %cst = arith.constant dense<0.000000e+00> : vector<1x8xf32>
    %2 = vector.multi_reduction <add>, %0, %cst [2] : vector<1x8x8xf32> to vector<1x8xf32>
    %3 = vector.shape_cast %2 : vector<1x8xf32> to vector<1x8x1xf32>
    %cst_5 = arith.constant 1.000000e+00 : f32
    %4 = vector.broadcast %cst_5 : f32 to vector<1x8x1xf32>
    %5 = arith.addf %3, %4 : vector<1x8x1xf32>
    %6 = math.rsqrt %5 : vector<1x8x1xf32>
    %7 = math.absf %6 : vector<1x8x1xf32>
    %cst_6 = arith.constant 0x7F800000 : f32
    %8 = vector.broadcast %cst_6 : f32 to vector<1x8x1xf32>
    %9 = arith.cmpf oeq, %7, %8 : vector<1x8x1xf32>
    %cst_7 = arith.constant 0.000000e+00 : f32
    %10 = vector.broadcast %cst_7 : f32 to vector<1x8x1xf32>
    %11 = arith.select %9, %10, %6 : vector<1x8x1xi1>, vector<1x8x1xf32>
    %12 = tpu.concatenate %0, %1 in 2 : vector<1x8x8xf32>, vector<1x8x16xf32> -> vector<1x8x24xf32>
    %13 = vector.broadcast %11 : vector<1x8x1xf32> to vector<1x8x24xf32>
    %14 = arith.mulf %13, %12 : vector<1x8x24xf32>
    "tpu.trace_start"() <{level = 10 : i32, message = "bji,bjk->bik"}> : () -> ()
    %cst_8 = arith.constant dense<0.000000e+00> : vector<1x8x24xf32>
    %15 = tpu.matmul %0, %14, %cst_8 {dimension_numbers = #tpu.dot_dimension_numbers<[1], [1], [2], [2], [0, 0, 0, 2, 1, 2], [0], [0]>} : vector<1x8x8xf32>, vector<1x8x24xf32>, vector<1x8x24xf32> -> vector<1x8x24xf32>
    "tpu.trace_stop"() : () -> ()
    %16 = arith.addf %15, %14 : vector<1x8x24xf32>
    %17 = vector.broadcast %11 : vector<1x8x1xf32> to vector<1x8x24xf32>
    %18 = arith.mulf %17, %16 : vector<1x8x24xf32>
    %c0_9 = arith.constant 0 : index
    %c0_10 = arith.constant 0 : index
    %19 = vector.load %arg4[%c0_9, %c0_10] : memref<24x32xf32, #tpu.memory_space<vmem>>, vector<24x32xf32>
    "tpu.trace_start"() <{level = 10 : i32, message = "bnk,ko->bno"}> : () -> ()
    %cst_11 = arith.constant dense<0.000000e+00> : vector<1x8x32xf32>
    %20 = tpu.matmul %18, %19, %cst_11 {dimension_numbers = #tpu.dot_dimension_numbers<[2], [0], [0, 1], [1], [0, 0, 0, 1, 1, 1], [], []>} : vector<1x8x24xf32>, vector<24x32xf32>, vector<1x8x32xf32> -> vector<1x8x32xf32>
    "tpu.trace_stop"() : () -> ()
    %c0_12 = arith.constant 0 : index
    %c0_13 = arith.constant 0 : index
    %21 = vector.load %arg6[%c0_12, %c0_13] : memref<1x32xf32, #tpu.memory_space<vmem>>, vector<1x32xf32>
    %22 = vector.shape_cast %21 : vector<1x32xf32> to vector<1x1x32xf32>
    %23 = vector.broadcast %22 : vector<1x1x32xf32> to vector<1x8x32xf32>
    %24 = arith.addf %20, %23 : vector<1x8x32xf32>
    %25 = arith.negf %24 : vector<1x8x32xf32>
    %26 = math.exp %25 : vector<1x8x32xf32>
    %cst_14 = arith.constant 1.000000e+00 : f32
    %27 = vector.broadcast %cst_14 : f32 to vector<1x8x32xf32>
    %28 = arith.addf %27, %26 : vector<1x8x32xf32>
    %29 = arith.divf %27, %28 : vector<1x8x32xf32>
    %30 = vector.extract_strided_slice %29 {offsets = [0, 0, 0], sizes = [1, 8, 16], strides = [1, 1, 1]} : vector<1x8x32xf32> to vector<1x8x16xf32>
    %31 = vector.extract_strided_slice %29 {offsets = [0, 0, 16], sizes = [1, 8, 16], strides = [1, 1, 1]} : vector<1x8x32xf32> to vector<1x8x16xf32>
    %32 = tpu.concatenate %30, %31 in 1 : vector<1x8x16xf32>, vector<1x8x16xf32> -> vector<1x16x16xf32>
    %c0_15 = arith.constant 0 : index
    %c0_16 = arith.constant 0 : index
    %33 = vector.load %arg3[%c0_15, %c0_16] : memref<16x16xf32, #tpu.memory_space<vmem>>, vector<16x16xf32>
    %34 = vector.shape_cast %33 : vector<16x16xf32> to vector<1x16x16xf32>
    "tpu.trace_start"() <{level = 10 : i32, message = "bij,bjh->bih"}> : () -> ()
    %cst_17 = arith.constant dense<0.000000e+00> : vector<1x16x16xf32>
    %35 = tpu.matmul %34, %32, %cst_17 {dimension_numbers = #tpu.dot_dimension_numbers<[2], [1], [1], [2], [0, 0, 0, 1, 1, 2], [0], [0]>} : vector<1x16x16xf32>, vector<1x16x16xf32>, vector<1x16x16xf32> -> vector<1x16x16xf32>
    "tpu.trace_stop"() : () -> ()
    %36 = vector.extract_strided_slice %35 {offsets = [0, 0, 0], sizes = [1, 8, 16], strides = [1, 1, 1]} : vector<1x16x16xf32> to vector<1x8x16xf32>
    %37 = vector.extract_strided_slice %35 {offsets = [0, 8, 0], sizes = [1, 8, 16], strides = [1, 1, 1]} : vector<1x16x16xf32> to vector<1x8x16xf32>
    %38 = arith.mulf %36, %1 : vector<1x8x16xf32>
    %39 = tpu.concatenate %0, %38 in 2 : vector<1x8x8xf32>, vector<1x8x16xf32> -> vector<1x8x24xf32>
    %40 = vector.broadcast %11 : vector<1x8x1xf32> to vector<1x8x24xf32>
    %41 = arith.mulf %40, %39 : vector<1x8x24xf32>
    "tpu.trace_start"() <{level = 10 : i32, message = "bji,bjk->bik"}> : () -> ()
    %cst_18 = arith.constant dense<0.000000e+00> : vector<1x8x24xf32>
    %42 = tpu.matmul %0, %41, %cst_18 {dimension_numbers = #tpu.dot_dimension_numbers<[1], [1], [2], [2], [0, 0, 0, 2, 1, 2], [0], [0]>} : vector<1x8x8xf32>, vector<1x8x24xf32>, vector<1x8x24xf32> -> vector<1x8x24xf32>
    "tpu.trace_stop"() : () -> ()
    %43 = arith.addf %42, %41 : vector<1x8x24xf32>
    %44 = vector.broadcast %11 : vector<1x8x1xf32> to vector<1x8x24xf32>
    %45 = arith.mulf %44, %43 : vector<1x8x24xf32>
    %c0_19 = arith.constant 0 : index
    %c0_20 = arith.constant 0 : index
    %46 = vector.load %arg5[%c0_19, %c0_20] : memref<24x16xf32, #tpu.memory_space<vmem>>, vector<24x16xf32>
    "tpu.trace_start"() <{level = 10 : i32, message = "bnk,ko->bno"}> : () -> ()
    %cst_21 = arith.constant dense<0.000000e+00> : vector<1x8x16xf32>
    %47 = tpu.matmul %45, %46, %cst_21 {dimension_numbers = #tpu.dot_dimension_numbers<[2], [0], [0, 1], [1], [0, 0, 0, 1, 1, 1], [], []>} : vector<1x8x24xf32>, vector<24x16xf32>, vector<1x8x16xf32> -> vector<1x8x16xf32>
    "tpu.trace_stop"() : () -> ()
    %c0_22 = arith.constant 0 : index
    %c0_23 = arith.constant 0 : index
    %48 = vector.load %arg7[%c0_22, %c0_23] : memref<1x16xf32, #tpu.memory_space<vmem>>, vector<1x16xf32>
    %49 = vector.shape_cast %48 : vector<1x16xf32> to vector<1x1x16xf32>
    %50 = vector.broadcast %49 : vector<1x1x16xf32> to vector<1x8x16xf32>
    %51 = arith.addf %47, %50 : vector<1x8x16xf32>
    %52 = math.tanh %51 : vector<1x8x16xf32>
    %53 = arith.mulf %37, %1 : vector<1x8x16xf32>
    %cst_24 = arith.constant 1.000000e+00 : f32
    %54 = vector.broadcast %cst_24 : f32 to vector<1x8x16xf32>
    %55 = arith.subf %54, %37 : vector<1x8x16xf32>
    %56 = arith.mulf %55, %52 : vector<1x8x16xf32>
    %57 = arith.addf %53, %56 : vector<1x8x16xf32>
    %c0_25 = arith.constant 0 : index
    %c0_26 = arith.constant 0 : index
    %c0_27 = arith.constant 0 : index
    %58 = vector.load %arg8[%c0_25, %c0_26, %c0_27] : memref<1x8x16xf32, #tpu.memory_space<vmem>>, vector<1x8x16xf32>
    tpu.vector_store %arg8[%c0_25, %c0_26, %c0_27], %57 {strides = array<i32>} : memref<1x8x16xf32, #tpu.memory_space<vmem>>, vector<1x8x16xf32>,
    return
  }
  func.func @transform_0(%arg0: i32) -> (i32, i32, i32) {
    %c0_i32 = arith.constant 0 : i32
    %c0_i32_0 = arith.constant 0 : i32
    %c0_i32_1 = arith.constant 0 : i32
    return %arg0, %c0_i32, %c0_i32_0 : i32, i32, i32
  }
  func.func @transform_1(%arg0: i32) -> (i32, i32, i32) {
    %c0_i32 = arith.constant 0 : i32
    %c0_i32_0 = arith.constant 0 : i32
    %c0_i32_1 = arith.constant 0 : i32
    return %arg0, %c0_i32, %c0_i32_0 : i32, i32, i32
  }
  func.func @transform_2(%arg0: i32) -> (i32, i32) {
    %c0_i32 = arith.constant 0 : i32
    %c0_i32_0 = arith.constant 0 : i32
    %c0_i32_1 = arith.constant 0 : i32
    return %c0_i32, %c0_i32_0 : i32, i32
  }
  func.func @transform_3(%arg0: i32) -> (i32, i32) {
    %c0_i32 = arith.constant 0 : i32
    %c0_i32_0 = arith.constant 0 : i32
    %c0_i32_1 = arith.constant 0 : i32
    return %c0_i32, %c0_i32_0 : i32, i32
  }
  func.func @transform_4(%arg0: i32) -> (i32, i32) {
    %c0_i32 = arith.constant 0 : i32
    %c0_i32_0 = arith.constant 0 : i32
    %c0_i32_1 = arith.constant 0 : i32
    return %c0_i32, %c0_i32_0 : i32, i32
  }
  func.func @transform_5(%arg0: i32) -> (i32, i32) {
    %c0_i32 = arith.constant 0 : i32
    %c0_i32_0 = arith.constant 0 : i32
    %c0_i32_1 = arith.constant 0 : i32
    return %c0_i32, %c0_i32_0 : i32, i32
  }
  func.func @transform_6(%arg0: i32) -> (i32, i32) {
    %c0_i32 = arith.constant 0 : i32
    %c0_i32_0 = arith.constant 0 : i32
    %c0_i32_1 = arith.constant 0 : i32
    return %c0_i32, %c0_i32_0 : i32, i32
  }
  func.func @transform_7(%arg0: i32) -> (i32, i32, i32) {
    %c0_i32 = arith.constant 0 : i32
    %c0_i32_0 = arith.constant 0 : i32
    %c0_i32_1 = arith.constant 0 : i32
    return %arg0, %c0_i32, %c0_i32_0 : i32, i32, i32
  }
}

</mosaic_0001>

<bundles_post_ra>
// kernel: tgcn_cell.1
= control target key start
LH: loop header
LB: loop body
LE: loop exit
PB: predicated region body
PF: predicated region fallthrough
CT: control target
= control target key end

     0   :  { %s966_s24 = smov 0   ;;  %s1066_s0 = inlined_call_operand.vmem [shape: f32[2,8,8], index: 0, kind: input, shape index: {}]   ;;  %s1067_s1 = inlined_call_operand.vmem [shape: f32[2,8,16], index: 1, kind: input, shape index: {}]   ;;  %s1068_s2 = inlined_call_operand.vmem [shape: f32[16,16], index: 2, kind: input, shape index: {}]   ;;  %s1069_s3 = inlined_call_operand.vmem [shape: f32[24,32], index: 3, kind: input, shape index: {}]   ;;  %s1070_s4 = inlined_call_operand.vmem [shape: f32[24,16], index: 4, kind: input, shape index: {}]   ;;  %s1071_s5 = inlined_call_operand.vmem [shape: f32[1,32], index: 5, kind: input, shape index: {}]   ;;  %s1072_s6 = inlined_call_operand.vmem [shape: f32[1,16], index: 6, kind: input, shape index: {}]   ;;  %s1073_s7 = inlined_call_operand.vmem [shape: f32[2,8,16], index: 7, kind: output, shape index: {}]  }
   0x1 LB: > { %s824_s25 = sadd.s32 4294967295, %s920_s24   ;;  %p828_p0 = scmp.ge.s32.totalorder %s920_s24, 1  ;;  %s920_s24 = sphi %s966_s24, %s17_s24  }
   0x2   : > { %p245_p1 = scmp.lt.s32.totalorder %s920_s24, 3 }
   0x4   : > { %p246_p2 = pnand %p828_p0, %p245_p1 }
   0x5   : > { %p279_p3 = scmp.lt.s32.totalorder (!%p246_p2), %s824_s25, 1  ;;  %s924_s10 = smov (!%p246_p2), 8  }
   0x6   : > { %249 = sbr.rel (%p246_p2) target bundleno = 1447 (0x5a7), region = 48  ;;  %s925_s21 = smov (!%p246_p2), 112  }
   0xb   : > { %s1075_s25 = smov (!%p279_p3, %s824_s25), 1  ;;  %vm293_vm0 = vcmask 64512   ;;  %v922_v2 = vmov 0.0   ;;  %vm923_vm1 = vmmov 0   ;;  %v416_v13 = vld [vmem:[%s1069_s3 + $0x10] sm:$0xff]  ;;  %v415_v14 = vld [vmem:[%s1069_s3 + $0x8] sm:$0xff] }
   0xc   : > { %s974_s26 = sshll.u32 %s1075_s25, 3  ;;  %859 = vmatprep.subr.mxu0 %v922_v2  ;;  %861 = vmatprep.mubr.msk.f32.mxu0 %vm923_vm1, %v922_v2  ;;  %v414_v15 = vld [vmem:[%s1069_s3] sm:$0xff]  ;;  %vm424_vm3 = vcmask 195584   ;;  %vm510_vm4 = vcmask 130048   ;;  %v509_v30 = vld [vmem:[%s1068_s2 + $0x8] sm:$0xff]  ;;  %v672_v37 = vld [vmem:[%s1070_s4 + $0x10] sm:$0xff] }
   0xd   : > { %s282_s29 = scalar_lea.vmem %s1066_s0, %s974_s26  ;;  %s286_s9 = scalar_lea.vmem %s1067_s1, %s974_s26  ;;  %864 = vmatprep.subr.mxu1 %v922_v2  ;;  %870 = vmatprep.mubr.msk.f32.mxu1 %vm923_vm1, %v922_v2  ;;  %v833_v20 = vld [vmem:[%s1071_s5] ss:$0 sm:$0xff]  ;;  %v671_v38 = vld [vmem:[%s1070_s4 + $0x8] sm:$0xff] }
   0xe   : > { %v980_v0 = vld [vmem:[%s282_s29] sm:$0xff]  ;;  %865 = vmatpush3.msra.mxu1 %v416_v13  ;;  %s290_s13 = scalar_lea.vmem %s1073_s7, %s974_s26 }
   0xf   : > { %v294_v1 = vsel %vm293_vm0, %v980_v0, 0.0  ;;  %308 = vxpose.xlu1.b32.start.end [1/1] (short) (narrow) %v980_v0, 8  ;;  %v995_v3 = vld [vmem:[%s286_s9] sm:$0xff]  ;;  %866 = vmatprep.subr.mxu1 %v922_v2 }
  0x10   : > { %295 = vadd.xlane.f32.xlu0 %v294_v1  ;;  %867 = vmatpush3.msra.mxu1 %v415_v14  ;;  %v508_v27 = vld [vmem:[%s1068_s2] sm:$0xff] }
  0x11   : > { %868 = vmatprep.subr.mxu1 %v922_v2  ;;  %v670_v39 = vld [vmem:[%s1070_s4] sm:$0xff] }
  0x12   : > { %869 = vmatpush3.msra.mxu1 %v414_v15  ;;  %v839_v44 = vld [vmem:[%s1072_s6] ss:$0 sm:$0xff] }
  0x13   : > { %885 = vmatprep.subr.mxu1 %v922_v2 }
  0x26   : > { %303 = vrot.lane.b32.xlu0 %v995_v3, %s924_s10 }
  0x8b   : > { %v324_v11 = vpop.trf.xlu1 }
  0x99   : > { %v296_v4 = vpop.xlane.xlu0 %295 }
  0x9a   : > { %v297_v5 = vadd.f32 1.0, %v296_v4 }
  0x9c   : > { %906 = vrsqrt.f32 %v297_v5 }
  0x9d   : > { %v304_v6 = vpop.permute.xlu0 %303 }
  0x9e   : > { %v306_v9 = vsel %vm293_vm0, %v980_v0, %v304_v6 }
  0xa9   : > { %v907_v7 = vpop.eup %906 }
  0xaa   : > { %v299_v8 = vand.u32 2147483647, %v907_v7 }
  0xac   : > { %vm300_vm2 = vcmp.eq.f32.partialorder %v299_v8, inf }
  0xad   : > { %v1001_v10 = vsel %vm300_vm2, 0.0, %v907_v7 }
  0xae   : > { %v307_v12 = vmul.f32 %v306_v9, %v1001_v10 }
  0xb0   : > { %860 = vmatpush3.msra.mxu0 %v307_v12 }
  0xb1   : > { %862 = vmatmul.mubr.msk.f32.vlgmr.msra.gmra.mxu0 %vm293_vm0, %v324_v11 }
  0xb2   : > { %877 = vmatprep.mubr.msk.f32.mxu0 %vm510_vm4, %v508_v27 }
 0x171   : > { %v409_v16 = vpop.f32.mrf.mxu0 }
 0x172   : > { %v410_v17 = vadd.f32 %v409_v16, %v307_v12 }
 0x173   : > { %v863_v18 = vpop.f32.mrf.mxu0 }
 0x174   : > { %v413_v19 = vmul.f32 %v410_v17, %v1001_v10 }
 0x176   : > { %871 = vmatmul.mubr.msk.f32.vlgmr.msra.gmra.mxu1 %vm424_vm3, %v413_v19 }
 0x177   : > { %891 = vmatprep.mubr.msk.f32.mxu1 %vm923_vm1, %v922_v2  ;;  %886 = vmatpush3.msra.mxu1 %v672_v37 }
 0x178   : > { %887 = vmatprep.subr.mxu1 %v922_v2 }
 0x179   : > { %888 = vmatpush3.msra.mxu1 %v671_v38 }
 0x17a   : > { %889 = vmatprep.subr.mxu1 %v922_v2 }
 0x17b   : > { %890 = vmatpush3.msra.mxu1 %v670_v39 }
 0x236   : > { %v494_v21 = vpop.f32.mrf.mxu1 }
 0x237   : > { %v495_v22 = vadd.f32 %v833_v20, %v494_v21 }
 0x238   : > { %v872_v23 = vpop.f32.mrf.mxu1 }
 0x239   : > { %v835_v24 = vmul.f32 -1.442695, %v495_v22 }
 0x23b   : > { %908 = vpow2.f32 %v835_v24 }
 0x248   : > { %v909_v25 = vpop.eup %908 }
 0x249   : > { %v501_v26 = vadd.f32 1.0, %v909_v25 }
 0x24b   : > { %910 = vrcp.f32 %v501_v26 }
 0x258   : > { %v911_v28 = vpop.eup %910 }
 0x259   : > { %505 = vrot.lane.b32.xlu1 %v911_v28, %s925_s21 }
 0x2cb   : > { %v506_v29 = vpop.permute.xlu1 %505 }
 0x2cc   : > { %873 = vmatprep.subr.mxu0 %v506_v29 }
 0x2cd   : > { %874 = vmatpush3.msra.mxu0 %v506_v29 }
 0x2ce   : > { %875 = vmatprep.subr.mxu0 %v911_v28 }
 0x2cf   : > { %876 = vmatpush3.msra.mxu0 %v911_v28 }
 0x2d0   : > { %878 = vmatmul.mubr.msk.f32.vlgmr.msra.gmra.mxu0 %vm510_vm4, %v509_v30  ;;  %880 = vmatprep.subr.mxu0 %v922_v2 }
 0x2d1   : > { %882 = vmatprep.mubr.msk.f32.mxu0 %vm923_vm1, %v922_v2 }
 0x390   : > { %v879_v31 = vpop.f32.mrf.mxu0 }
 0x391   : > { %v755_v48 = vsub.f32 1.0, %v879_v31  ;;  %v754_v50 = vmul.f32 %v879_v31, %v995_v3 }
 0x392   : > { %v583_v32 = vpop.f32.mrf.mxu0 }
 0x393   : > { %v592_v33 = vmul.f32 %v583_v32, %v995_v3 }
 0x395   : > { %594 = vrot.lane.b32.xlu0 %v592_v33, %s924_s10 }
 0x407   : > { %v595_v34 = vpop.permute.xlu0 %594 }
 0x408   : > { %v597_v35 = vsel %vm293_vm0, %v980_v0, %v595_v34 }
 0x409   : > { %v598_v36 = vmul.f32 %v597_v35, %v1001_v10 }
 0x40b   : > { %881 = vmatpush3.msra.mxu0 %v598_v36 }
 0x40c   : > { %883 = vmatmul.mubr.msk.f32.vlgmr.msra.gmra.mxu0 %vm293_vm0, %v324_v11 }
 0x4cc   : > { %v665_v40 = vpop.f32.mrf.mxu0 }
 0x4cd   : > { %v666_v41 = vadd.f32 %v665_v40, %v598_v36 }
 0x4ce   : > { %v884_v42 = vpop.f32.mrf.mxu0 }
 0x4cf   : > { %v669_v43 = vmul.f32 %v666_v41, %v1001_v10 }
 0x4d1   : > { %892 = vmatmul.mubr.msk.f32.vlgmr.msra.gmra.mxu1 %vm424_vm3, %v669_v43 }
 0x591   : > { %v749_v45 = vpop.f32.mrf.mxu1 }
 0x592   : > { %v750_v46 = vadd.f32 %v839_v44, %v749_v45 }
 0x593   : > { %v893_v47 = vpop.f32.mrf.mxu1 }
 0x594   : > { %912 = vtanh.f32 %v750_v46 }
 0x5a1   : > { %v913_v49 = vpop.eup %912 }
 0x5a2   : > { %v756_v51 = vmul.f32 %v913_v49, %v755_v48 }
 0x5a4   : > { %v757_v52 = vadd.f32 %v756_v51, %v754_v50 }
 0x5a6   : > { %758 = vst.msk [vmem:[%s290_s13] sm:$0xff] %vm510_vm4, %v757_v52 }
 0x5a7 PF: > { %s17_s24 = sadd.s32 1, %s920_s24  }
 0x5a8   : > { %p14_p4 = scmp.ge.s32.totalorder %s17_s24, 4  }
 0x5aa   :  { %16 = sbr.rel (!%p14_p4) target bundleno = 1 (0x1), region = 81 }

</bundles_post_ra>
